<compile_context>
chip_gen: v7x
topology: tpu7x:2x2x1
jax: 0.10.0
libtpu: 0.0.40
codegen_flags: <defaults>
</compile_context>

<pallas_src>
import jax
import jax.numpy as jnp
from jax.experimental import pallas as pl
from jax.experimental.pallas import tpu as pltpu

LEAKY_SLOPE = 0.01      # nn.LeakyReLU default
BN_EPS = 1e-5           # nn.BatchNorm1d default


def _leaky_relu(v):
    return jnp.where(v > 0, v, LEAKY_SLOPE * v)


def _round_up(n, m):
    return ((n + m - 1) // m) * m


# -----------------------------------------------------------------------------
# Kernel
# -----------------------------------------------------------------------------
def disc_xz_kernel(x_ref, z_ref, wx_ref, wz_ref, w1_ref, vec_ref, out_ref):
    # Packed per-channel params (all f32):
    bx = vec_ref[0:1, :]      # fc_x bias with BN folded in
    bz = vec_ref[1:2, :]      # fc_z bias
    b1 = vec_ref[2:3, :]      # fc1 bias
    w2 = vec_ref[3:4, :]      # fc2 weight row (128,)
    b2s = vec_ref[4:5, :]     # fc2 bias / 128, replicated across lanes

    # fc_x (BN already folded into wx/bx) -> LeakyReLU
    hx = jnp.dot(x_ref[...], wx_ref[...], preferred_element_type=jnp.float32) + bx
    hx = _leaky_relu(hx)

    # fc_z -> LeakyReLU  (dropout == identity in eval)
    hz = jnp.dot(z_ref[...], wz_ref[...], preferred_element_type=jnp.float32) + bz
    hz = _leaky_relu(hz)

    # cat([hx, hz], dim=1) @ W1 + b1 as a single K=256 matmul (full MXU depth).
    cat = jnp.concatenate(
        [hx.astype(jnp.bfloat16), hz.astype(jnp.bfloat16)], axis=-1)  # (tb, 256)
    h1 = jnp.dot(cat, w1_ref[...], preferred_element_type=jnp.float32) + b1
    h1 = _leaky_relu(h1)      # dropout == identity in eval

    # fc2 (128 -> 1): VPU multiply + lane reduction; sum_k(b2/128) == b2.
    out = jnp.sum(h1 * w2 + b2s, axis=-1, keepdims=True)
    out_ref[...] = out.astype(out_ref.dtype)


# -----------------------------------------------------------------------------
# Wrapper
# -----------------------------------------------------------------------------
def discriminator_xz_forward(x, z, kparams, *, batch_tile=512):
    B = x.shape[0]
    dz = z.shape[1]

    # Batch tile: multiple of 16 rows (bf16 sublane tiling), bounded by batch_tile.
    tb = max(16, (min(batch_tile, _round_up(B, 16)) // 16) * 16)
    b_pad = _round_up(B, tb)

    # Host-side prep: pad x to 128 features (unmasked lane loads), pad batch to
    # the tile, cast matmul inputs to bf16 (halves HBM->VMEM bytes).
    x_p = jnp.zeros((b_pad, 128), jnp.bfloat16).at[:B, :121].set(
        x.astype(jnp.bfloat16))
    z_p = jnp.zeros((b_pad, dz), jnp.bfloat16).at[:B, :].set(
        z.astype(jnp.bfloat16))

    batch_map = lambda i: (i, 0)
    const_map = lambda i: (0, 0)

    out = pl.pallas_call(
        disc_xz_kernel,
        out_shape=jax.ShapeDtypeStruct((b_pad, 1), jnp.float32),
        grid=(b_pad // tb,),
        in_specs=[
            pl.BlockSpec((tb, 128), batch_map),    # x tile (bf16, padded to 128)
            pl.BlockSpec((tb, dz), batch_map),     # z tile (bf16)
            pl.BlockSpec((128, 128), const_map),   # wx (BN folded, row-padded)
            pl.BlockSpec((dz, 128), const_map),    # wz
            pl.BlockSpec((256, 128), const_map),   # w1 (K=256 fused)
            pl.BlockSpec((8, 128), const_map),     # packed biases / fc2 row
        ],
        out_specs=pl.BlockSpec((tb, 1), batch_map),
        compiler_params=pltpu.CompilerParams(
            dimension_semantics=("parallel",)),
    )(x_p, z_p, kparams["wx"], kparams["wz"], kparams["w1"], kparams["vec"])
    return out[:B]


# -----------------------------------------------------------------------------
# Parameters (PyTorch-equivalent raw params + kernel-side folding/packing)
# -----------------------------------------------------------------------------
def _linear_init(key, fan_in, fan_out):
    # PyTorch nn.Linear default init: U(-1/sqrt(fan_in), 1/sqrt(fan_in))
    kw, kb = jax.random.split(key)
    bound = 1.0 / jnp.sqrt(float(fan_in))
    w = jax.random.uniform(kw, (fan_in, fan_out), jnp.float32, -bound, bound)
    b = jax.random.uniform(kb, (1, fan_out), jnp.float32, -bound, bound)
    return w, b


def make_params(key, latent_dim=32):
    k1, k2, k3, k4 = jax.random.split(key, 4)
    wx, bx = _linear_init(k1, 121, 128)
    wz, bz = _linear_init(k2, latent_dim, 128)
    w1, b1 = _linear_init(k3, 256, 128)
    w2, b2 = _linear_init(k4, 128, 1)
    return {
        "wx": wx, "bx": bx,
        # BatchNorm1d(128) default params / running stats (eval mode)
        "gamma": jnp.ones((1, 128), jnp.float32),
        "beta": jnp.zeros((1, 128), jnp.float32),
        "rmean": jnp.zeros((1, 128), jnp.float32),
        "rvar": jnp.ones((1, 128), jnp.float32),
        "wz": wz, "bz": bz,
        "w1": w1, "b1": b1,
        "w2": w2, "b2": b2,
    }


def fold_params(p):
    """Fold BN into fc_x (in f32, before bf16 cast), pad wx rows to 128, pack
    all per-channel vectors into one (8,128) f32 operand."""
    scale = p["gamma"] * jax.lax.rsqrt(p["rvar"] + BN_EPS)          # (1,128)
    wx_f = p["wx"] * scale                                           # (121,128)
    bx_f = (p["bx"] - p["rmean"]) * scale + p["beta"]                # (1,128)
    wx_pad = jnp.zeros((128, 128), jnp.float32).at[:121, :].set(wx_f)

    vec = jnp.zeros((8, 128), jnp.float32)
    vec = vec.at[0, :].set(bx_f[0])
    vec = vec.at[1, :].set(p["bz"][0])
    vec = vec.at[2, :].set(p["b1"][0])
    vec = vec.at[3, :].set(p["w2"][:, 0])
    vec = vec.at[4, :].set(jnp.full((128,), p["b2"][0, 0] / 128.0, jnp.float32))

    return {
        "wx": wx_pad.astype(jnp.bfloat16),   # (128,128)
        "wz": p["wz"].astype(jnp.bfloat16),  # (latent,128)
        "w1": p["w1"].astype(jnp.bfloat16),  # (256,128)
        "vec": vec,                          # (8,128) f32
    }


# -----------------------------------------------------------------------------
# References
# -----------------------------------------------------------------------------
def _reference_folded(x, z, kp):
    """Pure-JAX reference using the same folded/bf16 operands as the kernel."""
    B = x.shape[0]
    vec = kp["vec"]
    xb = jnp.zeros((B, 128), jnp.float32).at[:, :121].set(x).astype(jnp.bfloat16)
    zb = z.astype(jnp.bfloat16)
    hx = _leaky_relu(
        jnp.dot(xb, kp["wx"], preferred_element_type=jnp.float32) + vec[0:1])
    hz = _leaky_relu(
        jnp.dot(zb, kp["wz"], preferred_element_type=jnp.float32) + vec[1:2])
    cat = jnp.concatenate(
        [hx.astype(jnp.bfloat16), hz.astype(jnp.bfloat16)], axis=-1)
    h1 = _leaky_relu(
        jnp.dot(cat, kp["w1"], preferred_element_type=jnp.float32) + vec[2:3])
    return jnp.sum(h1 * vec[3:4] + vec[4:5], axis=-1, keepdims=True)


def _reference_raw(x, z, p):
    """Exact f32 eval-mode math of the PyTorch module (no folding / no bf16)."""
    hx = x @ p["wx"] + p["bx"]
    hx = (hx - p["rmean"]) * jax.lax.rsqrt(p["rvar"] + BN_EPS) * p["gamma"] + p["beta"]
    hx = _leaky_relu(hx)
    hz = _leaky_relu(z @ p["wz"] + p["bz"])
    xz = jnp.concatenate([hx, hz], axis=-1)
    h1 = _leaky_relu(xz @ p["w1"] + p["b1"])
    return h1 @ p["w2"] + p["b2"]


# -----------------------------------------------------------------------------
# Demo / correctness check
# -----------------------------------------------------------------------------
if __name__ == "__main__":
    latent_dim = 32
    B = 8
    key = jax.random.PRNGKey(0)
    kx, kz, kp = jax.random.split(key, 3)

    x = jax.random.normal(kx, (B, 121), jnp.float32)
    z = jax.random.normal(kz, (B, latent_dim), jnp.float32)

    raw_params = make_params(kp, latent_dim)
    kernel_params = fold_params(raw_params)

    out = discriminator_xz_forward(x, z, kernel_params)
    out = jax.block_until_ready(out)

    ref_bf16 = _reference_folded(x, z, kernel_params)   # same math path as kernel
    ref_f32 = _reference_raw(x, z, raw_params)           # exact eval-mode module math

    assert out.shape == (B, 1)
    assert jnp.allclose(out, ref_bf16, atol=2e-3, rtol=2e-3), "mismatch vs folded bf16 reference"
    assert jnp.allclose(out, ref_f32, atol=3e-2, rtol=0.0), "mismatch vs f32 module reference"
    print("KERNEL_OK")
</pallas_src>

<mosaic_0001>
module attributes {stable_mosaic.version = 11 : i64} {
  func.func @disc_xz_kernel(%arg0: i32, %arg1: memref<16x128xbf16, #tpu.memory_space<vmem>>, %arg2: memref<16x32xbf16, #tpu.memory_space<vmem>>, %arg3: memref<128x128xbf16, #tpu.memory_space<vmem>>, %arg4: memref<32x128xbf16, #tpu.memory_space<vmem>>, %arg5: memref<256x128xbf16, #tpu.memory_space<vmem>>, %arg6: memref<8x128xf32, #tpu.memory_space<vmem>>, %arg7: memref<16x1xf32, #tpu.memory_space<vmem>>) attributes {dimension_semantics = [#tpu.dimension_semantics<parallel>], iteration_bounds = array<i64: 1>, scalar_prefetch = 0 : i64, scratch_operands = 0 : i64, tpu.core_type = #tpu.core_type<tc>, window_params = [{transform_indices = @transform_0, window_bounds = array<i64: 16, 128>}, {transform_indices = @transform_1, window_bounds = array<i64: 16, 32>}, {pipeline_mode = #tpu.pipeline_mode<synchronous>, transform_indices = @transform_2, window_bounds = array<i64: 128, 128>}, {pipeline_mode = #tpu.pipeline_mode<synchronous>, transform_indices = @transform_3, window_bounds = array<i64: 32, 128>}, {pipeline_mode = #tpu.pipeline_mode<synchronous>, transform_indices = @transform_4, window_bounds = array<i64: 256, 128>}, {pipeline_mode = #tpu.pipeline_mode<synchronous>, transform_indices = @transform_5, window_bounds = array<i64: 8, 128>}, {transform_indices = @transform_6, window_bounds = array<i64: 16, 1>}]} {
    %c0 = arith.constant 0 : index
    %c0_0 = arith.constant 0 : index
    %0 = vector.load %arg6[%c0, %c0_0] : memref<8x128xf32, #tpu.memory_space<vmem>>, vector<1x128xf32>
    %c1 = arith.constant 1 : index
    %c0_1 = arith.constant 0 : index
    %1 = vector.load %arg6[%c1, %c0_1] : memref<8x128xf32, #tpu.memory_space<vmem>>, vector<1x128xf32>
    %c2 = arith.constant 2 : index
    %c0_2 = arith.constant 0 : index
    %2 = vector.load %arg6[%c2, %c0_2] : memref<8x128xf32, #tpu.memory_space<vmem>>, vector<1x128xf32>
    %c3 = arith.constant 3 : index
    %c0_3 = arith.constant 0 : index
    %3 = vector.load %arg6[%c3, %c0_3] : memref<8x128xf32, #tpu.memory_space<vmem>>, vector<1x128xf32>
    %c4 = arith.constant 4 : index
    %c0_4 = arith.constant 0 : index
    %4 = vector.load %arg6[%c4, %c0_4] : memref<8x128xf32, #tpu.memory_space<vmem>>, vector<1x128xf32>
    %c0_5 = arith.constant 0 : index
    %c0_6 = arith.constant 0 : index
    %5 = vector.load %arg1[%c0_5, %c0_6] : memref<16x128xbf16, #tpu.memory_space<vmem>>, vector<16x128xbf16>
    %c0_7 = arith.constant 0 : index
    %c0_8 = arith.constant 0 : index
    %6 = vector.load %arg3[%c0_7, %c0_8] : memref<128x128xbf16, #tpu.memory_space<vmem>>, vector<128x128xbf16>
    %cst = arith.constant dense<0.000000e+00> : vector<16x128xf32>
    %7 = tpu.matmul %5, %6, %cst {dimension_numbers = #tpu.dot_dimension_numbers<[1], [0], [0], [1], [0, 0, 1, 1], [], []>} : vector<16x128xbf16>, vector<128x128xbf16>, vector<16x128xf32> -> vector<16x128xf32>
    %8 = vector.broadcast %0 : vector<1x128xf32> to vector<16x128xf32>
    %9 = arith.addf %7, %8 : vector<16x128xf32>
    %cst_9 = arith.constant 0.000000e+00 : f32
    %10 = vector.broadcast %cst_9 : f32 to vector<16x128xf32>
    %11 = arith.cmpf ogt, %9, %10 : vector<16x128xf32>
    %cst_10 = arith.constant 0.00999999977 : f32
    %12 = vector.broadcast %cst_10 : f32 to vector<16x128xf32>
    %13 = arith.mulf %12, %9 : vector<16x128xf32>
    %14 = arith.select %11, %9, %13 : vector<16x128xi1>, vector<16x128xf32>
    %c0_11 = arith.constant 0 : index
    %c0_12 = arith.constant 0 : index
    %15 = vector.load %arg2[%c0_11, %c0_12] : memref<16x32xbf16, #tpu.memory_space<vmem>>, vector<16x32xbf16>
    %c0_13 = arith.constant 0 : index
    %c0_14 = arith.constant 0 : index
    %16 = vector.load %arg4[%c0_13, %c0_14] : memref<32x128xbf16, #tpu.memory_space<vmem>>, vector<32x128xbf16>
    %cst_15 = arith.constant dense<0.000000e+00> : vector<16x128xf32>
    %17 = tpu.matmul %15, %16, %cst_15 {dimension_numbers = #tpu.dot_dimension_numbers<[1], [0], [0], [1], [0, 0, 1, 1], [], []>} : vector<16x32xbf16>, vector<32x128xbf16>, vector<16x128xf32> -> vector<16x128xf32>
    %18 = vector.broadcast %1 : vector<1x128xf32> to vector<16x128xf32>
    %19 = arith.addf %17, %18 : vector<16x128xf32>
    %cst_16 = arith.constant 0.000000e+00 : f32
    %20 = vector.broadcast %cst_16 : f32 to vector<16x128xf32>
    %21 = arith.cmpf ogt, %19, %20 : vector<16x128xf32>
    %cst_17 = arith.constant 0.00999999977 : f32
    %22 = vector.broadcast %cst_17 : f32 to vector<16x128xf32>
    %23 = arith.mulf %22, %19 : vector<16x128xf32>
    %24 = arith.select %21, %19, %23 : vector<16x128xi1>, vector<16x128xf32>
    %25 = arith.truncf %14 : vector<16x128xf32> to vector<16x128xbf16>
    %26 = arith.truncf %24 : vector<16x128xf32> to vector<16x128xbf16>
    %27 = tpu.concatenate %25, %26 in 1 : vector<16x128xbf16>, vector<16x128xbf16> -> vector<16x256xbf16>
    %c0_18 = arith.constant 0 : index
    %c0_19 = arith.constant 0 : index
    %28 = vector.load %arg5[%c0_18, %c0_19] : memref<256x128xbf16, #tpu.memory_space<vmem>>, vector<256x128xbf16>
    %cst_20 = arith.constant dense<0.000000e+00> : vector<16x128xf32>
    %29 = tpu.matmul %27, %28, %cst_20 {dimension_numbers = #tpu.dot_dimension_numbers<[1], [0], [0], [1], [0, 0, 1, 1], [], []>} : vector<16x256xbf16>, vector<256x128xbf16>, vector<16x128xf32> -> vector<16x128xf32>
    %30 = vector.broadcast %2 : vector<1x128xf32> to vector<16x128xf32>
    %31 = arith.addf %29, %30 : vector<16x128xf32>
    %cst_21 = arith.constant 0.000000e+00 : f32
    %32 = vector.broadcast %cst_21 : f32 to vector<16x128xf32>
    %33 = arith.cmpf ogt, %31, %32 : vector<16x128xf32>
    %cst_22 = arith.constant 0.00999999977 : f32
    %34 = vector.broadcast %cst_22 : f32 to vector<16x128xf32>
    %35 = arith.mulf %34, %31 : vector<16x128xf32>
    %36 = arith.select %33, %31, %35 : vector<16x128xi1>, vector<16x128xf32>
    %37 = vector.broadcast %3 : vector<1x128xf32> to vector<16x128xf32>
    %38 = arith.mulf %36, %37 : vector<16x128xf32>
    %39 = vector.broadcast %4 : vector<1x128xf32> to vector<16x128xf32>
    %40 = arith.addf %38, %39 : vector<16x128xf32>
    %cst_23 = arith.constant dense<0.000000e+00> : vector<16xf32>
    %41 = vector.multi_reduction <add>, %40, %cst_23 [1] : vector<16x128xf32> to vector<16xf32>
    %42 = vector.shape_cast %41 : vector<16xf32> to vector<16x1xf32>
    %c0_24 = arith.constant 0 : index
    %c0_25 = arith.constant 0 : index
    %43 = vector.load %arg7[%c0_24, %c0_25] : memref<16x1xf32, #tpu.memory_space<vmem>>, vector<16x1xf32>
    tpu.vector_store %arg7[%c0_24, %c0_25], %42 {strides = array<i32>} : memref<16x1xf32, #tpu.memory_space<vmem>>, vector<16x1xf32>,
    return
  }
  func.func @transform_0(%arg0: i32) -> (i32, i32) {
    %c0_i32 = arith.constant 0 : i32
    %c0_i32_0 = arith.constant 0 : i32
    return %arg0, %c0_i32 : i32, i32
  }
  func.func @transform_1(%arg0: i32) -> (i32, i32) {
    %c0_i32 = arith.constant 0 : i32
    %c0_i32_0 = arith.constant 0 : i32
    return %arg0, %c0_i32 : i32, i32
  }
  func.func @transform_2(%arg0: i32) -> (i32, i32) {
    %c0_i32 = arith.constant 0 : i32
    %c0_i32_0 = arith.constant 0 : i32
    %c0_i32_1 = arith.constant 0 : i32
    return %c0_i32, %c0_i32_0 : i32, i32
  }
  func.func @transform_3(%arg0: i32) -> (i32, i32) {
    %c0_i32 = arith.constant 0 : i32
    %c0_i32_0 = arith.constant 0 : i32
    %c0_i32_1 = arith.constant 0 : i32
    return %c0_i32, %c0_i32_0 : i32, i32
  }
  func.func @transform_4(%arg0: i32) -> (i32, i32) {
    %c0_i32 = arith.constant 0 : i32
    %c0_i32_0 = arith.constant 0 : i32
    %c0_i32_1 = arith.constant 0 : i32
    return %c0_i32, %c0_i32_0 : i32, i32
  }
  func.func @transform_5(%arg0: i32) -> (i32, i32) {
    %c0_i32 = arith.constant 0 : i32
    %c0_i32_0 = arith.constant 0 : i32
    %c0_i32_1 = arith.constant 0 : i32
    return %c0_i32, %c0_i32_0 : i32, i32
  }
  func.func @transform_6(%arg0: i32) -> (i32, i32) {
    %c0_i32 = arith.constant 0 : i32
    %c0_i32_0 = arith.constant 0 : i32
    return %arg0, %c0_i32 : i32, i32
  }
}

</mosaic_0001>

<bundles_post_ra>
// kernel: tpu_custom_call.1
= control target key start
LH: loop header
LB: loop body
LE: loop exit
PB: predicated region body
PF: predicated region fallthrough
CT: control target
= control target key end

     0   :  { %11 = vsyncpa [#allocation3], 0  ;;  %s908_s0 = inlined_call_operand.hbm [shape: bf16[16,128], index: 0, kind: input, shape index: {}]   ;;  %s909_s1 = inlined_call_operand.hbm [shape: bf16[16,32], index: 1, kind: input, shape index: {}]   ;;  %s910_s2 = inlined_call_operand.hbm [shape: bf16[128,128], index: 2, kind: input, shape index: {}]   ;;  %s911_s3 = inlined_call_operand.hbm [shape: bf16[32,128], index: 3, kind: input, shape index: {}]   ;;  %s912_s4 = inlined_call_operand.hbm [shape: bf16[256,128], index: 4, kind: input, shape index: {}]   ;;  %s913_s5 = inlined_call_operand.vmem [shape: f32[8,128], index: 5, kind: input, shape index: {}]   ;;  %s914_s6 = inlined_call_operand.vmem [shape: f32[16,1], index: 6, kind: output, shape index: {}]  }
   0x1   :  { %12 = vsyncpa [#allocation5], 0 }
   0x2   :  { %13 = vsyncpa [#allocation8], 0  ;;  %s754_s21 = smov [#allocation4]   ;;  %s755_s23 = smov [#allocation7]  }
   0x3   :  { %s31_s22 = sshll.u32 %s754_s21, 4  ;;  %s55_s24 = sshll.u32 %s755_s23, 4  ;;  %s32_s22 = int_to_ptr.vmem [resolvable:$true] %s31_s22  ;;  %s798_s24 = int_to_ptr.vmem [resolvable:$true] %s55_s24 }
   0x4   :  { %s638_s27 = scalar_lea.hbm %s909_s1, 128 }
   0x5   :  { %p639_p0 = scmp.ne.s32.totalorder %s909_s1, %s638_s27  ;;  %p642_p1 = scmp.lt.u32.totalorder %s638_s27, %s909_s1 }
   0x7   :  { %p644_p2 = pnand %p642_p1, %p639_p0 }
   0x9   :  { %647 = shalt.err (!%p644_p2)
}
   0xa   :  { %s648_s8 = scalar_lea.vmem %s32_s22, 128  ;;  %p653_p4 = scmp.lt.s32.totalorder %s32_s22, %s32_s22 }
   0xb   :  { %p649_p3 = scmp.ne.s32.totalorder %s32_s22, %s648_s8  ;;  %p654_p5 = scmp.lt.s32.totalorder %s648_s8, %s648_s8 }
   0xd   :  { %p655_p6 = por %p654_p5, %p653_p4 }
   0xf   :  { %p656_p7 = pnand %p655_p6, %p649_p3 }
  0x11   :  { %659 = shalt.err (!%p656_p7)
}
  0x12   :  { %s756_s9 = smov 64   ;;  %s757_s10 = smov 4  }
  0x13   :  { %37 = dma.hbm_to_vmem [thread:$0]  %s909_s1, 128, %s32_s22, [#allocation5], %s756_s9, %s756_s9, %s757_s10  }
  0x14   :  { %s660_s15 = scalar_lea.hbm %s911_s3, 256 }
  0x15   :  { %p661_p8 = scmp.ne.s32.totalorder %s911_s3, %s660_s15  ;;  %p664_p9 = scmp.lt.u32.totalorder %s660_s15, %s911_s3 }
  0x17   :  { %p666_p10 = pnand %p664_p9, %p661_p8 }
  0x19   :  { %669 = shalt.err (!%p666_p10)
}
  0x1a   :  { %s670_s20 = scalar_lea.vmem %s798_s24, 256  ;;  %p675_p12 = scmp.lt.s32.totalorder %s798_s24, %s798_s24 }
  0x1b   :  { %p671_p11 = scmp.ne.s32.totalorder %s798_s24, %s670_s20  ;;  %p676_p13 = scmp.lt.s32.totalorder %s670_s20, %s670_s20 }
  0x1d   :  { %p677_p0 = por %p676_p13, %p675_p12 }
  0x1f   :  { %p678_p1 = pnand %p677_p0, %p671_p11 }
  0x21   :  { %681 = shalt.err (!%p678_p1)
}
  0x22   :  { %61 = dma.hbm_to_vmem [thread:$0]  %s911_s3, 256, %s798_s24, [#allocation8], %s756_s9, %s756_s9, %s757_s10  }
  0x23   :  { %s758_s22 = smov [#allocation2]   ;;  %s759_s25 = smov [#allocation6]  }
  0x24   :  { %s19_s23 = sshll.u32 %s758_s22, 4  ;;  %s43_s26 = sshll.u32 %s759_s25, 4  ;;  %s20_s23 = int_to_ptr.vmem [resolvable:$true] %s19_s23  ;;  %s835_s26 = int_to_ptr.vmem [resolvable:$true] %s43_s26 }
  0x25   :  { %s682_s29 = scalar_lea.hbm %s908_s0, 128 }
  0x26   :  { %p683_p2 = scmp.ne.s32.totalorder %s908_s0, %s682_s29  ;;  %p686_p3 = scmp.lt.u32.totalorder %s682_s29, %s908_s0 }
  0x28   :  { %p688_p4 = pnand %p686_p3, %p683_p2 }
  0x2a   :  { %691 = shalt.err (!%p688_p4)
}
  0x2b   :  { %s692_s3 = scalar_lea.vmem %s20_s23, 128  ;;  %p697_p6 = scmp.lt.s32.totalorder %s20_s23, %s20_s23 }
  0x2c   :  { %p693_p5 = scmp.ne.s32.totalorder %s20_s23, %s692_s3  ;;  %p698_p7 = scmp.lt.s32.totalorder %s692_s3, %s692_s3 }
  0x2e   :  { %p699_p8 = por %p698_p7, %p697_p6 }
  0x30   :  { %p700_p9 = pnand %p699_p8, %p693_p5 }
  0x32   :  { %703 = shalt.err (!%p700_p9)
}
  0x33   :  { %25 = dma.hbm_to_vmem [thread:$0]  %s908_s0, 128, %s20_s23, [#allocation3], %s756_s9, %s756_s9, %s757_s10  }
  0x34   :  { %s704_s15 = scalar_lea.hbm %s910_s2, 1024 }
  0x35   :  { %p705_p10 = scmp.ne.s32.totalorder %s910_s2, %s704_s15  ;;  %p708_p11 = scmp.lt.u32.totalorder %s704_s15, %s910_s2 }
  0x37   :  { %p710_p12 = pnand %p708_p11, %p705_p10 }
  0x39   :  { %713 = shalt.err (!%p710_p12)
}
  0x3a   :  { %s714_s20 = scalar_lea.vmem %s835_s26, 1024  ;;  %p719_p0 = scmp.lt.s32.totalorder %s835_s26, %s835_s26 }
  0x3b   :  { %p715_p13 = scmp.ne.s32.totalorder %s835_s26, %s714_s20  ;;  %p720_p1 = scmp.lt.s32.totalorder %s714_s20, %s714_s20 }
  0x3d   :  { %p721_p2 = por %p720_p1, %p719_p0 }
  0x3f   :  { %p722_p3 = pnand %p721_p2, %p715_p13 }
  0x41   :  { %725 = shalt.err (!%p722_p3)
}
  0x42   :  { %49 = dma.hbm_to_vmem [thread:$0]  %s910_s2, 1024, %s835_s26, [#allocation5], %s756_s9, %s756_s9, %s757_s10  }
  0x43   :  { %s760_s21 = smov [#allocation9]   ;;  %s726_s27 = scalar_lea.hbm %s912_s4, 2048 }
  0x44   :  { %s67_s22 = sshll.u32 %s760_s21, 4  ;;  %p727_p4 = scmp.ne.s32.totalorder %s912_s4, %s726_s27  ;;  %s68_s22 = int_to_ptr.vmem [resolvable:$true] %s67_s22 }
  0x45   :  { %p730_p5 = scmp.lt.u32.totalorder %s726_s27, %s912_s4 }
  0x47   :  { %p732_p6 = pnand %p730_p5, %p727_p4 }
  0x49   :  { %735 = shalt.err (!%p732_p6)
}
  0x4a   :  { %s736_s8 = scalar_lea.vmem %s68_s22, 2048  ;;  %p741_p8 = scmp.lt.s32.totalorder %s68_s22, %s68_s22 }
  0x4b   :  { %p737_p7 = scmp.ne.s32.totalorder %s68_s22, %s736_s8  ;;  %p742_p9 = scmp.lt.s32.totalorder %s736_s8, %s736_s8 }
  0x4d   :  { %p743_p10 = por %p742_p9, %p741_p8 }
  0x4f   :  { %p744_p11 = pnand %p743_p10, %p737_p7 }
  0x51   :  { %747 = shalt.err (!%p744_p11)
}
  0x52   :  { %73 = dma.hbm_to_vmem [thread:$0]  %s912_s4, 2048, %s68_s22, [#allocation8], %s756_s9, %s756_s9, %s757_s10  }
  0x53   :  { %748 = dma.done.wait [#allocation3], 128  }
  0x54   :  { %749 = vsyncadd [#allocation3], 4294967168 }
  0x55   :  { %750 = dma.done.wait [#allocation5], 1152  }
  0x56   :  { %751 = vsyncadd [#allocation5], 4294966144 }
  0x57   :  { %752 = dma.done.wait [#allocation8], 2304  }
  0x58   :  { %753 = vsyncadd [#allocation8], 4294964992  ;;  %v761_v0 = vmov 0.0   ;;  %vm762_vm0 = vmmov 0   ;;  %v610_v1 = vld [vmem:[#allocation6] sm:$0xff]   ;;  %v611_v2 = vld [vmem:[#allocation6 + $0x8] sm:$0xff]  }
  0x59   :  { %573 = vmatprep.subr.bf16.mxu0 %v761_v0  ;;  %593 = vmatprep.subr.bf16.mxu1 %v761_v0  ;;  %v615_v3 = vld [vmem:[#allocation7] sm:$0xff]   ;;  %v612_v4 = vld [vmem:[#allocation6 + $0x10] sm:$0xff]   ;;  %v617_v5 = vld [vmem:[#allocation7 + $0x8] sm:$0xff]   ;;  %vm247_vm1 = vcmask 261120   ;;  %vm495_vm8 = vcmask 7168  }
  0x5a   :  { %597 = vmatprep.mubr.msk.bf16.mxu1 %vm762_vm0, %v761_v0  ;;  %589 = vmatprep.mubr.msk.bf16.mxu0 %vm762_vm0, %v761_v0  ;;  %v613_v6 = vld [vmem:[#allocation6 + $0x18] sm:$0xff]   ;;  %v614_v8 = vld [vmem:[#allocation6 + $0x20] sm:$0xff]   ;;  %v622_v9 = vld [vmem:[#allocation9 + $0x40] sm:$0xff]  }
  0x5b   :  { %574 = vmatpush3.bf16.msra.mxu0 %v610_v1  ;;  %594 = vmatpush3.bf16.msra.mxu1 %v615_v3  ;;  %v619_v7 = vld [vmem:[#allocation4] sm:$0xff]   ;;  %v623_v10 = vld [vmem:[#allocation9] sm:$0xff]   ;;  %v626_v13 = vld [vmem:[#allocation9 + $0x50] sm:$0xff]  }
  0x5c   :  { %575 = vmatprep.subr.bf16.mxu0 %v761_v0  ;;  %595 = vmatprep.subr.bf16.mxu1 %v761_v0  ;;  %v624_v11 = vld [vmem:[#allocation9 + $0x48] sm:$0xff]   ;;  %v616_v14 = vld [vmem:[#allocation6 + $0x28] sm:$0xff]   ;;  %v618_v15 = vld [vmem:[#allocation6 + $0x30] sm:$0xff]  }
  0x5d   :  { %v625_v12 = vld [vmem:[#allocation9 + $0x8] sm:$0xff]   ;;  %v627_v16 = vld [vmem:[#allocation9 + $0x10] sm:$0xff]   ;;  %v628_v17 = vld [vmem:[#allocation9 + $0x58] sm:$0xff]  }
  0x5e   :  { %v629_v18 = vld [vmem:[#allocation9 + $0x18] sm:$0xff]   ;;  %v630_v19 = vld [vmem:[#allocation9 + $0x60] sm:$0xff]   ;;  %v620_v20 = vld [vmem:[#allocation6 + $0x38] sm:$0xff]  }
  0x5f   :  { %576 = vmatpush3.bf16.msra.mxu0 %v611_v2  ;;  %596 = vmatpush3.bf16.msra.mxu1 %v617_v5  ;;  %v621_v21 = vld [vmem:[#allocation2] sm:$0xff]   ;;  %v632_v23 = vld [vmem:[#allocation9 + $0x68] sm:$0xff]   ;;  %v634_v25 = vld [vmem:[#allocation9 + $0x70] sm:$0xff]  }
  0x60   :  { %577 = vmatprep.subr.bf16.mxu0 %v761_v0  ;;  %551 = vmatprep.subr.bf16.mxu1 %v622_v9  ;;  %v631_v22 = vld [vmem:[#allocation9 + $0x20] sm:$0xff]   ;;  %v633_v24 = vld [vmem:[#allocation9 + $0x28] sm:$0xff]   ;;  %v635_v26 = vld [vmem:[#allocation9 + $0x30] sm:$0xff]  }
  0x61   :  { %v636_v27 = vld [vmem:[#allocation9 + $0x78] sm:$0xff]   ;;  %v515_v29 = vld [vmem:[%s913_s5 + $0x1] ss:$0 sm:$0xff]  ;;  %v505_v41 = vld [vmem:[%s913_s5] ss:$0 sm:$0xff] }
  0x62   :  { %598 = vmatmul.mubr.msk.bf16.vlgmr.msra.gmra.mrb[0].mxu1 %vm247_vm1, %v619_v7  ;;  %v637_v28 = vld [vmem:[#allocation9 + $0x38] sm:$0xff]   ;;  %v520_v54 = vld [vmem:[%s913_s5 + $0x2] ss:$0 sm:$0xff]  ;;  %v537_v63 = vld [vmem:[%s913_s5 + $0x3] ss:$0 sm:$0xff] }
  0x63   :  { %578 = vmatpush3.bf16.msra.mxu0 %v612_v4  ;;  %552 = vmatpush3.bf16.msra.mxu1 %v623_v10  ;;  %v538_v1 = vld [vmem:[%s913_s5 + $0x4] ss:$0 sm:$0xff] }
  0x64   :  { %579 = vmatprep.subr.bf16.mxu0 %v761_v0  ;;  %553 = vmatprep.subr.bf16.mxu1 %v624_v11 }
  0x67   :  { %580 = vmatpush3.bf16.msra.mxu0 %v613_v6  ;;  %554 = vmatpush3.bf16.msra.mxu1 %v625_v12 }
  0x68   :  { %581 = vmatprep.subr.bf16.mxu0 %v761_v0  ;;  %555 = vmatprep.subr.bf16.mxu1 %v626_v13 }
  0x6b   :  { %582 = vmatpush3.bf16.msra.mxu0 %v614_v8  ;;  %556 = vmatpush3.bf16.msra.mxu1 %v627_v16 }
  0x6c   :  { %583 = vmatprep.subr.bf16.mxu0 %v761_v0  ;;  %557 = vmatprep.subr.bf16.mxu1 %v628_v17 }
  0x6f   :  { %584 = vmatpush3.bf16.msra.mxu0 %v616_v14  ;;  %558 = vmatpush3.bf16.msra.mxu1 %v629_v18 }
  0x70   :  { %585 = vmatprep.subr.bf16.mxu0 %v761_v0  ;;  %559 = vmatprep.subr.bf16.mxu1 %v630_v19 }
  0x73   :  { %586 = vmatpush3.bf16.msra.mxu0 %v618_v15  ;;  %560 = vmatpush3.bf16.msra.mxu1 %v631_v22 }
  0x74   :  { %587 = vmatprep.subr.bf16.mxu0 %v761_v0  ;;  %561 = vmatprep.subr.bf16.mxu1 %v632_v23 }
  0x77   :  { %588 = vmatpush3.bf16.msra.mxu0 %v620_v20  ;;  %562 = vmatpush3.bf16.msra.mxu1 %v633_v24 }
  0x78   :  { %563 = vmatprep.subr.bf16.mxu1 %v634_v25 }
  0x7a   :  { %590 = vmatmul.mubr.bf16.vlgmr.msra.gmra.mrb[0].mxu0 %v621_v21 }
  0x7b   :  { %564 = vmatpush3.bf16.msra.mxu1 %v635_v26 }
  0x7c   :  { %565 = vmatprep.subr.bf16.mxu1 %v636_v27 }
  0x7f   :  { %566 = vmatpush3.bf16.msra.mxu1 %v637_v28 }
 0x135   :  { %v285_v30 = vpop.f32.mrb[0].mxu1 }
 0x136   :  { %v286_v31 = vadd.f32 %v515_v29, %v285_v30  ;;  %v599_v32 = vpop.f32.mrb[1].mxu1 }
 0x137   :  { %v288_v33 = vpop.f32.mrb[2].mxu1 }
 0x138   :  { %vm292_vm2 = vcmp.gt.f32.partialorder %v286_v31, 0.0  ;;  %v294_v34 = vmul.f32 0.01, %v286_v31  ;;  %v289_v35 = vadd.f32 %v515_v29, %v288_v33  ;;  %v600_v36 = vpop.f32.mrb[3].mxu1 }
 0x13a   :  { %vm293_vm3 = vcmp.gt.f32.partialorder %v289_v35, 0.0  ;;  %v295_v37 = vmul.f32 0.01, %v289_v35  ;;  %v296_v38 = vsel %vm292_vm2, %v286_v31, %v294_v34 }
 0x13c   :  { %v297_v39 = vsel %vm293_vm3, %v289_v35, %v295_v37 }
 0x13d   :  { %v299_v40 = vpack.c.bf16 %v297_v39, %v296_v38 }
 0x13f   :  { %464 = vmatprep.mubr.bf16.mxu1 %v299_v40 }
 0x14d   :  { %v207_v42 = vpop.f32.mrb[0].mxu0 }
 0x14e   :  { %v208_v43 = vadd.f32 %v505_v41, %v207_v42  ;;  %v591_v44 = vpop.f32.mrb[1].mxu0 }
 0x14f   :  { %v210_v45 = vpop.f32.mrb[2].mxu0 }
 0x150   :  { %v216_v46 = vmul.f32 0.01, %v208_v43  ;;  %v211_v47 = vadd.f32 %v505_v41, %v210_v45  ;;  %v592_v48 = vpop.f32.mrb[3].mxu0  ;;  %vm214_vm4 = vcmp.gt.f32.partialorder %v208_v43, 0.0 }
 0x152   :  { %vm215_vm5 = vcmp.gt.f32.partialorder %v211_v47, 0.0  ;;  %v217_v49 = vmul.f32 0.01, %v211_v47  ;;  %v218_v50 = vsel %vm214_vm4, %v208_v43, %v216_v46 }
 0x154   :  { %v219_v51 = vsel %vm215_vm5, %v211_v47, %v217_v49 }
 0x155   :  { %v298_v52 = vpack.c.bf16 %v219_v51, %v218_v50 }
 0x157   :  { %465 = vmatmul.mubr.bf16.vlgmr.msra.gmra.mrb[4].mxu1 %v298_v52 }
 0x22a   :  { %v567_v53 = vpop.f32.mrb[4].mxu1 }
 0x22b   :  { %v568_v55 = vpop.f32.mrb[5].mxu1 }
 0x22c   :  { %v569_v56 = vadd.f32 %v568_v55, %v567_v53  ;;  %v570_v57 = vpop.f32.mrb[6].mxu1 }
 0x22d   :  { %v571_v58 = vpop.f32.mrb[7].mxu1 }
 0x22e   :  { %v467_v59 = vadd.f32 %v569_v56, %v520_v54  ;;  %v572_v60 = vadd.f32 %v571_v58, %v570_v57 }
 0x230   :  { %v475_v61 = vmul.f32 0.01, %v467_v59  ;;  %v470_v62 = vadd.f32 %v572_v60, %v520_v54  ;;  %vm473_vm6 = vcmp.gt.f32.partialorder %v467_v59, 0.0 }
 0x232   :  { %v476_v0 = vmul.f32 0.01, %v470_v62  ;;  %v477_v2 = vsel %vm473_vm6, %v467_v59, %v475_v61  ;;  %vm474_vm7 = vcmp.gt.f32.partialorder %v470_v62, 0.0 }
 0x233   :  { %v483_v3 = vmul.f32 %v537_v63, %v477_v2 }
 0x234   :  { %v478_v4 = vsel %vm474_vm7, %v470_v62, %v476_v0 }
 0x235   :  { %v489_v5 = vadd.f32 %v538_v1, %v483_v3  ;;  %v484_v6 = vmul.f32 %v537_v63, %v478_v4 }
 0x237   :  { %491 = vadd.xlane.f32.xlu0 %v489_v5  ;;  %v490_v7 = vadd.f32 %v538_v1, %v484_v6 }
 0x23b   :  { %493 = vadd.xlane.f32.xlu0 %v490_v7 }
 0x2c4   :  { %v492_v8 = vpop.xlane.xlu0 %491 }
 0x2c5   :  { %496 = vst.msk [vmem:[%s914_s6] sm:$0xff] %vm495_vm8, %v492_v8 }
 0x2c8   :  { %v494_v9 = vpop.xlane.xlu0 %493 }
 0x2c9   :  { %497 = vst.msk [vmem:[%s914_s6 + $0x8] sm:$0xff] %vm495_vm8, %v494_v9 }
 0x2ca   :  { %502 = vsyncpa [#allocation3], 1 }
 0x2cb   :  { %503 = vsyncpa [#allocation5], 1 }
 0x2cc   :  { %504 = vsyncpa [#allocation8], 1 }

</bundles_post_ra>
